<compile_context>
chip_gen: v6e
topology: v6e:2x2x1
jax: 0.10.0
libtpu: 0.0.40
codegen_flags: <defaults>
</compile_context>

<pallas_src>
import functools

import jax
import jax.numpy as jnp
from jax.experimental import pallas as pl
from jax.experimental.pallas import tpu as pltpu

HIDDEN = 5
LANES = 128
MAX_TILE_ROWS = 4096      # 4096 slab-rows * 128 lanes = 512K batch rows / step
SMALL_N_THRESHOLD = 1024  # below this, pallas launch overhead >> ~120 FLOPs


def _round_up(a, b):
    return ((a + b - 1) // b) * b


def simple_nn_kernel(xt_ref, w1_ref, b1_ref, w2_ref, b2_ref, o_ref):
    # xt_ref: [2, TR, 128] VMEM (features leading, batch dense on sublanes+lanes)
    # w1_ref: [10] SMEM (row-major [5,2]); b1_ref: [5]; w2_ref: [5]; b2_ref: [1]
    # o_ref : [TR, 128] VMEM (lane-dense output)
    x0 = xt_ref[0]  # [TR, 128]
    x1 = xt_ref[1]  # [TR, 128]

    # Start the accumulator at b2 (no separate +b2 pass at the end).
    acc = jnp.full(x0.shape, b2_ref[0], dtype=jnp.float32)

    # Fully unrolled VPU FMAs over the 5 hidden units; hidden layer never
    # materialized, weights are SMEM scalars (broadcast for free on the VPU).
    for j in range(HIDDEN):
        h_j = x0 * w1_ref[2 * j] + x1 * w1_ref[2 * j + 1] + b1_ref[j]
        acc = acc + jnp.maximum(h_j, 0.0) * w2_ref[j]

    o_ref[...] = acc.astype(o_ref.dtype)


@functools.partial(
    jax.jit, static_argnames=("max_tile_rows", "min_pallas_rows"))
def simple_nn_forward(x, w1, b1, w2, b2, *,
                      max_tile_rows=MAX_TILE_ROWS,
                      min_pallas_rows=SMALL_N_THRESHOLD):
    """x: [N, 2] f32. PyTorch convention: W1 [5,2], b1 [5], W2 [1,5], b2 [1]."""
    n = x.shape[0]
    x = x.astype(jnp.float32)
    w1f = w1.reshape(-1).astype(jnp.float32)   # [10], row-major [5,2]
    b1f = b1.reshape(-1).astype(jnp.float32)   # [5]
    w2f = w2.reshape(-1).astype(jnp.float32)   # [5]
    b2f = b2.reshape(-1).astype(jnp.float32)   # [1]

    # Small-N fast path: let XLA fuse two tiny matmuls; the Pallas path only
    # pays off for large batches.
    if n < min_pallas_rows:
        h = jnp.maximum(x @ w1.astype(jnp.float32).T + b1f[None, :], 0.0)
        return h @ w2f[:, None] + b2f[None, :]

    # --- Pallas path: dense (rows, 128) slab layout -------------------------
    slabs = -(-n // LANES)                                  # ceil(n / 128)
    tile_rows = min(max_tile_rows, _round_up(slabs, 8))     # sublane-aligned
    slabs_pad = _round_up(slabs, tile_rows)
    n_blocks = slabs_pad // tile_rows
    n_pad = slabs_pad * LANES

    # Layout plumbing (single fused XLA pass in HBM): pad the batch, split it
    # into 128-lane slabs, put the feature axis leading.
    xt = jnp.pad(x, ((0, n_pad - n), (0, 0)))               # [n_pad, 2]
    xt = xt.reshape(slabs_pad, LANES, 2).transpose(2, 0, 1)  # [2, slabs_pad, 128]

    out = pl.pallas_call(
        simple_nn_kernel,
        out_shape=jax.ShapeDtypeStruct((slabs_pad, LANES), jnp.float32),
        grid=(n_blocks,),
        in_specs=[
            pl.BlockSpec((2, tile_rows, LANES), lambda i: (0, i, 0)),  # x (VMEM)
            pl.BlockSpec(memory_space=pltpu.SMEM),                     # w1 [10]
            pl.BlockSpec(memory_space=pltpu.SMEM),                     # b1 [5]
            pl.BlockSpec(memory_space=pltpu.SMEM),                     # w2 [5]
            pl.BlockSpec(memory_space=pltpu.SMEM),                     # b2 [1]
        ],
        out_specs=pl.BlockSpec((tile_rows, LANES), lambda i: (i, 0)),
        compiler_params=pltpu.CompilerParams(
            dimension_semantics=("parallel",)),
    )(xt, w1f, b1f, w2f, b2f)

    # Back to PyTorch layout [N, 1] (padded tail rows are sliced off).
    return out.reshape(n_pad, 1)[:n]


def init_params():
    """Deterministic init mimicking nn.Linear default (uniform +/- 1/sqrt(fan_in))."""
    key = jax.random.PRNGKey(0)
    k1, k2, k3, k4 = jax.random.split(key, 4)
    bound1 = 1.0 / jnp.sqrt(2.0)  # fan_in = 2
    bound2 = 1.0 / jnp.sqrt(5.0)  # fan_in = 5
    w1 = jax.random.uniform(k1, (5, 2), jnp.float32, -bound1, bound1)
    b1 = jax.random.uniform(k2, (5,), jnp.float32, -bound1, bound1)
    w2 = jax.random.uniform(k3, (1, 5), jnp.float32, -bound2, bound2)
    b2 = jax.random.uniform(k4, (1,), jnp.float32, -bound2, bound2)
    return w1, b1, w2, b2


if __name__ == "__main__":
    key = jax.random.PRNGKey(0)
    w1, b1, w2, b2 = init_params()

    def reference(xv):
        h = jnp.maximum(xv @ w1.T + b1[None, :], 0.0)
        return h @ w2.T + b2[None, :]

    # 1) Pallas-kernel path: batch large enough to exercise the kernel,
    #    including non-multiple-of-128 padding.
    x_big = jax.random.normal(jax.random.fold_in(key, 1), (2000, 2), jnp.float32)
    out_big = jax.block_until_ready(simple_nn_forward(x_big, w1, b1, w2, b2))
    assert out_big.shape == (2000, 1)
    assert jnp.allclose(out_big, reference(x_big), atol=1e-5, rtol=1e-5)

    # 2) Small-N fast path (the literal N=8 workload from the spec).
    x_small = jax.random.normal(jax.random.fold_in(key, 42), (8, 2), jnp.float32)
    out_small = jax.block_until_ready(simple_nn_forward(x_small, w1, b1, w2, b2))
    assert out_small.shape == (8, 1)
    assert jnp.allclose(out_small, reference(x_small), atol=1e-5, rtol=1e-5)

    print("KERNEL_OK")
</pallas_src>

<mosaic_0001>
module attributes {stable_mosaic.version = 11 : i64} {
  func.func @simple_nn_kernel(%arg0: i32, %arg1: memref<2x16x128xf32, #tpu.memory_space<vmem>>, %arg2: memref<10xf32, #tpu.memory_space<smem>>, %arg3: memref<5xf32, #tpu.memory_space<smem>>, %arg4: memref<5xf32, #tpu.memory_space<smem>>, %arg5: memref<1xf32, #tpu.memory_space<smem>>, %arg6: memref<16x128xf32, #tpu.memory_space<vmem>>) attributes {dimension_semantics = [#tpu.dimension_semantics<parallel>], iteration_bounds = array<i64: 1>, scalar_prefetch = 0 : i64, scratch_operands = 0 : i64, tpu.core_type = #tpu.core_type<tc>, window_params = [{transform_indices = @transform_0, window_bounds = array<i64: 2, 16, 128>}, {transform_indices = @transform_1, window_bounds = array<i64: 10>}, {transform_indices = @transform_2, window_bounds = array<i64: 5>}, {transform_indices = @transform_3, window_bounds = array<i64: 5>}, {transform_indices = @transform_4, window_bounds = array<i64: 1>}, {transform_indices = @transform_5, window_bounds = array<i64: 16, 128>}]} {
    %c0 = arith.constant 0 : index
    %c0_0 = arith.constant 0 : index
    %c0_1 = arith.constant 0 : index
    %0 = vector.load %arg1[%c0, %c0_0, %c0_1] : memref<2x16x128xf32, #tpu.memory_space<vmem>>, vector<1x16x128xf32>
    %1 = vector.shape_cast %0 : vector<1x16x128xf32> to vector<16x128xf32>
    %c1 = arith.constant 1 : index
    %c0_2 = arith.constant 0 : index
    %c0_3 = arith.constant 0 : index
    %2 = vector.load %arg1[%c1, %c0_2, %c0_3] : memref<2x16x128xf32, #tpu.memory_space<vmem>>, vector<1x16x128xf32>
    %3 = vector.shape_cast %2 : vector<1x16x128xf32> to vector<16x128xf32>
    %c0_4 = arith.constant 0 : index
    %4 = memref.load %arg5[%c0_4] : memref<1xf32, #tpu.memory_space<smem>>
    %5 = vector.broadcast %4 : f32 to vector<16x128xf32>
    %c0_5 = arith.constant 0 : index
    %6 = memref.load %arg2[%c0_5] : memref<10xf32, #tpu.memory_space<smem>>
    %7 = vector.broadcast %6 : f32 to vector<16x128xf32>
    %8 = arith.mulf %1, %7 : vector<16x128xf32>
    %c1_6 = arith.constant 1 : index
    %9 = memref.load %arg2[%c1_6] : memref<10xf32, #tpu.memory_space<smem>>
    %10 = vector.broadcast %9 : f32 to vector<16x128xf32>
    %11 = arith.mulf %3, %10 : vector<16x128xf32>
    %12 = arith.addf %8, %11 : vector<16x128xf32>
    %c0_7 = arith.constant 0 : index
    %13 = memref.load %arg3[%c0_7] : memref<5xf32, #tpu.memory_space<smem>>
    %14 = vector.broadcast %13 : f32 to vector<16x128xf32>
    %15 = arith.addf %12, %14 : vector<16x128xf32>
    %cst = arith.constant 0.000000e+00 : f32
    %16 = vector.broadcast %cst : f32 to vector<16x128xf32>
    %17 = arith.maximumf %15, %16 : vector<16x128xf32>
    %c0_8 = arith.constant 0 : index
    %18 = memref.load %arg4[%c0_8] : memref<5xf32, #tpu.memory_space<smem>>
    %19 = vector.broadcast %18 : f32 to vector<16x128xf32>
    %20 = arith.mulf %17, %19 : vector<16x128xf32>
    %21 = arith.addf %5, %20 : vector<16x128xf32>
    %c2 = arith.constant 2 : index
    %22 = memref.load %arg2[%c2] : memref<10xf32, #tpu.memory_space<smem>>
    %23 = vector.broadcast %22 : f32 to vector<16x128xf32>
    %24 = arith.mulf %1, %23 : vector<16x128xf32>
    %c3 = arith.constant 3 : index
    %25 = memref.load %arg2[%c3] : memref<10xf32, #tpu.memory_space<smem>>
    %26 = vector.broadcast %25 : f32 to vector<16x128xf32>
    %27 = arith.mulf %3, %26 : vector<16x128xf32>
    %28 = arith.addf %24, %27 : vector<16x128xf32>
    %c1_9 = arith.constant 1 : index
    %29 = memref.load %arg3[%c1_9] : memref<5xf32, #tpu.memory_space<smem>>
    %30 = vector.broadcast %29 : f32 to vector<16x128xf32>
    %31 = arith.addf %28, %30 : vector<16x128xf32>
    %cst_10 = arith.constant 0.000000e+00 : f32
    %32 = vector.broadcast %cst_10 : f32 to vector<16x128xf32>
    %33 = arith.maximumf %31, %32 : vector<16x128xf32>
    %c1_11 = arith.constant 1 : index
    %34 = memref.load %arg4[%c1_11] : memref<5xf32, #tpu.memory_space<smem>>
    %35 = vector.broadcast %34 : f32 to vector<16x128xf32>
    %36 = arith.mulf %33, %35 : vector<16x128xf32>
    %37 = arith.addf %21, %36 : vector<16x128xf32>
    %c4 = arith.constant 4 : index
    %38 = memref.load %arg2[%c4] : memref<10xf32, #tpu.memory_space<smem>>
    %39 = vector.broadcast %38 : f32 to vector<16x128xf32>
    %40 = arith.mulf %1, %39 : vector<16x128xf32>
    %c5 = arith.constant 5 : index
    %41 = memref.load %arg2[%c5] : memref<10xf32, #tpu.memory_space<smem>>
    %42 = vector.broadcast %41 : f32 to vector<16x128xf32>
    %43 = arith.mulf %3, %42 : vector<16x128xf32>
    %44 = arith.addf %40, %43 : vector<16x128xf32>
    %c2_12 = arith.constant 2 : index
    %45 = memref.load %arg3[%c2_12] : memref<5xf32, #tpu.memory_space<smem>>
    %46 = vector.broadcast %45 : f32 to vector<16x128xf32>
    %47 = arith.addf %44, %46 : vector<16x128xf32>
    %cst_13 = arith.constant 0.000000e+00 : f32
    %48 = vector.broadcast %cst_13 : f32 to vector<16x128xf32>
    %49 = arith.maximumf %47, %48 : vector<16x128xf32>
    %c2_14 = arith.constant 2 : index
    %50 = memref.load %arg4[%c2_14] : memref<5xf32, #tpu.memory_space<smem>>
    %51 = vector.broadcast %50 : f32 to vector<16x128xf32>
    %52 = arith.mulf %49, %51 : vector<16x128xf32>
    %53 = arith.addf %37, %52 : vector<16x128xf32>
    %c6 = arith.constant 6 : index
    %54 = memref.load %arg2[%c6] : memref<10xf32, #tpu.memory_space<smem>>
    %55 = vector.broadcast %54 : f32 to vector<16x128xf32>
    %56 = arith.mulf %1, %55 : vector<16x128xf32>
    %c7 = arith.constant 7 : index
    %57 = memref.load %arg2[%c7] : memref<10xf32, #tpu.memory_space<smem>>
    %58 = vector.broadcast %57 : f32 to vector<16x128xf32>
    %59 = arith.mulf %3, %58 : vector<16x128xf32>
    %60 = arith.addf %56, %59 : vector<16x128xf32>
    %c3_15 = arith.constant 3 : index
    %61 = memref.load %arg3[%c3_15] : memref<5xf32, #tpu.memory_space<smem>>
    %62 = vector.broadcast %61 : f32 to vector<16x128xf32>
    %63 = arith.addf %60, %62 : vector<16x128xf32>
    %cst_16 = arith.constant 0.000000e+00 : f32
    %64 = vector.broadcast %cst_16 : f32 to vector<16x128xf32>
    %65 = arith.maximumf %63, %64 : vector<16x128xf32>
    %c3_17 = arith.constant 3 : index
    %66 = memref.load %arg4[%c3_17] : memref<5xf32, #tpu.memory_space<smem>>
    %67 = vector.broadcast %66 : f32 to vector<16x128xf32>
    %68 = arith.mulf %65, %67 : vector<16x128xf32>
    %69 = arith.addf %53, %68 : vector<16x128xf32>
    %c8 = arith.constant 8 : index
    %70 = memref.load %arg2[%c8] : memref<10xf32, #tpu.memory_space<smem>>
    %71 = vector.broadcast %70 : f32 to vector<16x128xf32>
    %72 = arith.mulf %1, %71 : vector<16x128xf32>
    %c9 = arith.constant 9 : index
    %73 = memref.load %arg2[%c9] : memref<10xf32, #tpu.memory_space<smem>>
    %74 = vector.broadcast %73 : f32 to vector<16x128xf32>
    %75 = arith.mulf %3, %74 : vector<16x128xf32>
    %76 = arith.addf %72, %75 : vector<16x128xf32>
    %c4_18 = arith.constant 4 : index
    %77 = memref.load %arg3[%c4_18] : memref<5xf32, #tpu.memory_space<smem>>
    %78 = vector.broadcast %77 : f32 to vector<16x128xf32>
    %79 = arith.addf %76, %78 : vector<16x128xf32>
    %cst_19 = arith.constant 0.000000e+00 : f32
    %80 = vector.broadcast %cst_19 : f32 to vector<16x128xf32>
    %81 = arith.maximumf %79, %80 : vector<16x128xf32>
    %c4_20 = arith.constant 4 : index
    %82 = memref.load %arg4[%c4_20] : memref<5xf32, #tpu.memory_space<smem>>
    %83 = vector.broadcast %82 : f32 to vector<16x128xf32>
    %84 = arith.mulf %81, %83 : vector<16x128xf32>
    %85 = arith.addf %69, %84 : vector<16x128xf32>
    %c0_21 = arith.constant 0 : index
    %c0_22 = arith.constant 0 : index
    %86 = vector.load %arg6[%c0_21, %c0_22] : memref<16x128xf32, #tpu.memory_space<vmem>>, vector<16x128xf32>
    tpu.vector_store %arg6[%c0_21, %c0_22], %85 {strides = array<i32>} : memref<16x128xf32, #tpu.memory_space<vmem>>, vector<16x128xf32>,
    return
  }
  func.func @transform_0(%arg0: i32) -> (i32, i32, i32) {
    %c0_i32 = arith.constant 0 : i32
    %c0_i32_0 = arith.constant 0 : i32
    %c0_i32_1 = arith.constant 0 : i32
    return %c0_i32, %arg0, %c0_i32_0 : i32, i32, i32
  }
  func.func @transform_1(%arg0: i32) -> i32 {
    %c0_i32 = arith.constant 0 : i32
    %c0_i32_0 = arith.constant 0 : i32
    return %c0_i32 : i32
  }
  func.func @transform_2(%arg0: i32) -> i32 {
    %c0_i32 = arith.constant 0 : i32
    %c0_i32_0 = arith.constant 0 : i32
    return %c0_i32 : i32
  }
  func.func @transform_3(%arg0: i32) -> i32 {
    %c0_i32 = arith.constant 0 : i32
    %c0_i32_0 = arith.constant 0 : i32
    return %c0_i32 : i32
  }
  func.func @transform_4(%arg0: i32) -> i32 {
    %c0_i32 = arith.constant 0 : i32
    %c0_i32_0 = arith.constant 0 : i32
    return %c0_i32 : i32
  }
  func.func @transform_5(%arg0: i32) -> (i32, i32) {
    %c0_i32 = arith.constant 0 : i32
    %c0_i32_0 = arith.constant 0 : i32
    return %arg0, %c0_i32 : i32, i32
  }
}

</mosaic_0001>

<bundles_post_ra>
// kernel: simple_nn_forward.1
= control target key start
LH: loop header
LB: loop body
LE: loop exit
PB: predicated region body
PF: predicated region fallthrough
CT: control target
= control target key end

     0   :  { %11 = vsyncpa [#allocation5], 0  ;;  %s418_s0 = inlined_call_operand.vmem [shape: f32[2,16,128], index: 0, kind: input, shape index: {}]   ;;  %s419_s1 = inlined_call_operand.vmem [shape: f32[10], index: 1, kind: input, shape index: {}]   ;;  %s420_s2 = inlined_call_operand.vmem [shape: f32[5], index: 2, kind: input, shape index: {}]   ;;  %s421_s3 = inlined_call_operand.vmem [shape: f32[5], index: 3, kind: input, shape index: {}]   ;;  %s422_s4 = inlined_call_operand.<no memory space> [shape: f32[1], index: 4, kind: input, shape index: {}]   ;;  %s423_s5 = inlined_call_operand.hbm [shape: f32[16,128], index: 5, kind: output, shape index: {}]  }
   0x1   :  { %12 = vsyncpa [#allocation7], 0  ;;  %s32_s20 = sshll.u32 %s420_s2, 4  ;;  %s33_s20 = int_to_ptr.vmem [resolvable:$true] %s32_s20 }
   0x2   :  { %13 = vsyncpa [#allocation4], 0  ;;  %s22_s23 = sshll.u32 %s419_s1, 4  ;;  %s220_s24 = scalar_lea.vmem %s33_s20, 16  ;;  %s23_s23 = int_to_ptr.vmem [resolvable:$true] %s22_s23 }
   0x3   :  { %p221_p0 = scmp.ne.s32.totalorder %s33_s20, %s220_s24  ;;  %p225_p1 = scmp.lt.s32.totalorder %s33_s20, %s33_s20 }
   0x4   :  { %p226_p2 = scmp.lt.s32.totalorder %s220_s24, %s220_s24 }
   0x6   :  { %p227_p3 = por %p226_p2, %p225_p1 }
   0x8   :  { %p228_p4 = pnand %p227_p3, %p221_p0 }
   0xa   :  { %231 = shalt.err (!%p228_p4)
}
   0xb   :  { %s282_s25 = smov [#allocation6]   ;;  %s232_s26 = scalar_lea.vmem %s23_s23, 16 }
   0xc   :  { %35 = dma.vmem_to_smem %s33_s20, 16, %s282_s25, [#allocation7]  }
   0xd   :  { %p233_p5 = scmp.ne.s32.totalorder %s23_s23, %s232_s26  ;;  %p237_p6 = scmp.lt.s32.totalorder %s23_s23, %s23_s23 }
   0xe   :  { %p238_p7 = scmp.lt.s32.totalorder %s232_s26, %s232_s26 }
  0x10   :  { %p239_p8 = por %p238_p7, %p237_p6 }
  0x12   :  { %p240_p9 = pnand %p239_p8, %p233_p5 }
  0x14   :  { %243 = shalt.err (!%p240_p9)
}
  0x15   :  { %s283_s2 = smov [#allocation3]   ;;  %s42_s28 = sshll.u32 %s421_s3, 4  ;;  %s43_s28 = int_to_ptr.vmem [resolvable:$true] %s42_s28 }
  0x16   :  { %25 = dma.vmem_to_smem %s23_s23, 16, %s283_s2, [#allocation5]  }
  0x17   :  { %s244_s29 = scalar_lea.vmem %s43_s28, 16  ;;  %p249_p11 = scmp.lt.s32.totalorder %s43_s28, %s43_s28 }
  0x18   :  { %p245_p10 = scmp.ne.s32.totalorder %s43_s28, %s244_s29  ;;  %p250_p12 = scmp.lt.s32.totalorder %s244_s29, %s244_s29 }
  0x1a   :  { %p251_p13 = por %p250_p12, %p249_p11 }
  0x1c   :  { %p252_p0 = pnand %p251_p13, %p245_p10 }
  0x1e   :  { %255 = shalt.err (!%p252_p0)
}
  0x1f   :  { %s284_s30 = smov [#allocation8]  }
  0x20   :  { %45 = dma.vmem_to_smem %s43_s28, 16, %s284_s30, [#allocation7]  }
  0x21   :  { %276 = dma.done.wait [#allocation5], 16  }
  0x22   :  { %277 = vsyncadd [#allocation5], 4294967280 }
  0x23   :  { %278 = dma.done.wait [#allocation7], 32  }
  0x24   :  { %279 = vsyncadd [#allocation7], 4294967264 }
  0x25   :  { %57 = sfence }
  0x26   :  { %s65_s6 = sld [smem:[#allocation3]]  ;;  %v332_v0 = vld [vmem:[%s418_s0] sm:$0xff]  ;;  %v337_v1 = vld [vmem:[%s418_s0 + $0x8] sm:$0xff]  ;;  %v342_v2 = vld [vmem:[%s418_s0 + $0x10] sm:$0xff]  ;;  %v64_v20 = vstv %s422_s4 }
  0x27   :  { %s197_s7 = sld [smem:[#allocation3 + $0x1]]  ;;  %v347_v3 = vld [vmem:[%s418_s0 + $0x18] sm:$0xff] }
  0x28   :  { %s75_s8 = sld [smem:[#allocation6]] }
  0x29   :  { %s327_s9 = sld [smem:[#allocation8]] }
  0x2a   :  { %s198_s11 = sld [smem:[#allocation3 + $0x2]] }
  0x2b   :  { %s199_s16 = sld [smem:[#allocation3 + $0x3]] }
  0x2c   :  { %v66_v4 = vstv %s65_s6  ;;  %s349_s19 = sld [smem:[#allocation6 + $0x1]]  ;;  %s285_s6 = smov [#allocation9]  }
  0x2d   :  { %v67_v5 = vmul.f32 %v66_v4, %v332_v0  ;;  %v70_v6 = vstv %s197_s7  ;;  %s352_s20 = sld [smem:[#allocation8 + $0x1]]  ;;  %v68_v7 = vmul.f32 %v66_v4, %v337_v1  ;;  %s182_s7 = sshll.u32 %s285_s6, 4  ;;  %s183_s7 = int_to_ptr.vmem [resolvable:$true] %s182_s7 }
  0x2e   :  { %v71_v8 = vmul.f32 %v342_v2, %v70_v6  ;;  %s356_s21 = sld [smem:[#allocation3 + $0x4]]  ;;  %v72_v9 = vmul.f32 %v347_v3, %v70_v6  ;;  %v76_v10 = vstv %s75_s8  ;;  %s256_s8 = scalar_lea.vmem %s183_s7, 256 }
  0x2f   :  { %s359_s0 = sld [smem:[#allocation3 + $0x5]]  ;;  %v82_v21 = vstv %s327_s9  ;;  %p257_p1 = scmp.ne.s32.totalorder %s183_s7, %s256_s8 }
  0x30   :  { %v73_v11 = vadd.f32 %v71_v8, %v67_v5  ;;  %v88_v12 = vstv %s198_s11  ;;  %s361_s22 = sld [smem:[#allocation6 + $0x2]]  ;;  %v74_v13 = vadd.f32 %v72_v9, %v68_v7  ;;  %p261_p2 = scmp.lt.s32.totalorder %s183_s7, %s183_s7 }
  0x31   :  { %v89_v14 = vmul.f32 %v88_v12, %v332_v0  ;;  %v92_v15 = vstv %s199_s16  ;;  %s364_s23 = sld [smem:[#allocation8 + $0x2]]  ;;  %v90_v16 = vmul.f32 %v88_v12, %v337_v1  ;;  %p262_p3 = scmp.lt.s32.totalorder %s256_s8, %s256_s8 }
  0x32   :  { %v77_v17 = vadd.f32 %v76_v10, %v73_v11  ;;  %v93_v18 = vmul.f32 %v342_v2, %v92_v15  ;;  %s368_s24 = sld [smem:[#allocation3 + $0x6]]  ;;  %v78_v19 = vadd.f32 %v76_v10, %v74_v13  ;;  %v98_v22 = vstv %s349_s19 }
  0x33   :  { %s375_s2 = sld [smem:[#allocation3 + $0x7]]  ;;  %v94_v23 = vmul.f32 %v347_v3, %v92_v15  ;;  %v104_v28 = vstv %s352_s20  ;;  %p263_p4 = por %p262_p3, %p261_p2 }
  0x34   :  { %v79_v24 = vmax.f32 %v77_v17, 0.0  ;;  %v95_v25 = vadd.f32 %v93_v18, %v89_v14  ;;  %v110_v26 = vstv %s356_s21  ;;  %s379_s1 = sld [smem:[#allocation6 + $0x3]]  ;;  %v80_v27 = vmax.f32 %v78_v19, 0.0 }
  0x35   :  { %v111_v29 = vmul.f32 %v110_v26, %v332_v0  ;;  %v114_v30 = vstv %s359_s0  ;;  %s384_s27 = sld [smem:[#allocation8 + $0x3]]  ;;  %v96_v31 = vadd.f32 %v94_v23, %v90_v16  ;;  %v112_v35 = vmul.f32 %v110_v26, %v337_v1  ;;  %p264_p5 = pnand %p263_p4, %p257_p1 }
  0x36   :  { %v83_v32 = vmul.f32 %v82_v21, %v79_v24  ;;  %v99_v33 = vadd.f32 %v98_v22, %v95_v25  ;;  %v115_v34 = vmul.f32 %v342_v2, %v114_v30  ;;  %s387_s4 = sld [smem:[#allocation3 + $0x8]]  ;;  %v120_v36 = vstv %s361_s22 }
  0x37   :  { %s391_s28 = sld [smem:[#allocation3 + $0x9]]  ;;  %v84_v37 = vmul.f32 %v82_v21, %v80_v27  ;;  %v100_v38 = vadd.f32 %v98_v22, %v96_v31  ;;  %v116_v39 = vmul.f32 %v347_v3, %v114_v30  ;;  %v126_v49 = vstv %s364_s23 }
  0x38   :  { %v85_v40 = vadd.f32 %v83_v32, %v64_v20  ;;  %v101_v41 = vmax.f32 %v99_v33, 0.0  ;;  %v117_v42 = vadd.f32 %v115_v34, %v111_v29  ;;  %v132_v43 = vstv %s368_s24  ;;  %s395_s29 = sld [smem:[#allocation6 + $0x4]] }
  0x39   :  { %v133_v44 = vmul.f32 %v132_v43, %v332_v0  ;;  %v136_v45 = vstv %s375_s2  ;;  %v102_v46 = vmax.f32 %v100_v38, 0.0  ;;  %s402_s30 = sld [smem:[#allocation8 + $0x4]]  ;;  %v86_v52 = vadd.f32 %v84_v37, %v64_v20 }
  0x3a   :  { %v105_v47 = vmul.f32 %v104_v28, %v101_v41  ;;  %v121_v48 = vadd.f32 %v120_v36, %v117_v42  ;;  %v137_v50 = vmul.f32 %v342_v2, %v136_v45  ;;  %v142_v51 = vstv %s379_s1 }
  0x3b   :  { %v106_v53 = vmul.f32 %v104_v28, %v102_v46  ;;  %v118_v54 = vadd.f32 %v116_v39, %v112_v35  ;;  %v134_v62 = vmul.f32 %v132_v43, %v337_v1  ;;  %v148_v5 = vstv %s384_s27 }
  0x3c   :  { %v107_v55 = vadd.f32 %v105_v47, %v85_v40  ;;  %v123_v56 = vmax.f32 %v121_v48, 0.0  ;;  %v139_v57 = vadd.f32 %v137_v50, %v133_v44  ;;  %v154_v58 = vstv %s387_s4 }
  0x3d   :  { %v155_v59 = vmul.f32 %v154_v58, %v332_v0  ;;  %v158_v60 = vstv %s391_s28  ;;  %v122_v61 = vadd.f32 %v120_v36, %v118_v54  ;;  %v138_v9 = vmul.f32 %v347_v3, %v136_v45 }
  0x3e   :  { %v127_v63 = vmul.f32 %v126_v49, %v123_v56  ;;  %v143_v4 = vadd.f32 %v142_v51, %v139_v57  ;;  %v159_v6 = vmul.f32 %v342_v2, %v158_v60  ;;  %v164_v7 = vstv %s395_s29 }
  0x3f   :  { %v124_v8 = vmax.f32 %v122_v61, 0.0  ;;  %v156_v10 = vmul.f32 %v154_v58, %v337_v1  ;;  %v160_v0 = vmul.f32 %v347_v3, %v158_v60  ;;  %v108_v14 = vadd.f32 %v106_v53, %v86_v52 }
  0x40   :  { %v129_v11 = vadd.f32 %v127_v63, %v107_v55  ;;  %v145_v12 = vmax.f32 %v143_v4, 0.0  ;;  %v161_v13 = vadd.f32 %v159_v6, %v155_v59  ;;  %v140_v16 = vadd.f32 %v138_v9, %v134_v62 }
  0x41   :  { %v128_v15 = vmul.f32 %v126_v49, %v124_v8  ;;  %v162_v19 = vadd.f32 %v160_v0, %v156_v10  ;;  %v170_v20 = vstv %s402_s30 }
  0x42   :  { %v149_v17 = vmul.f32 %v148_v5, %v145_v12  ;;  %v165_v18 = vadd.f32 %v164_v7, %v161_v13  ;;  %v144_v21 = vadd.f32 %v142_v51, %v140_v16 }
  0x43   :  { %v166_v23 = vadd.f32 %v164_v7, %v162_v19  ;;  %v130_v24 = vadd.f32 %v128_v15, %v108_v14 }
  0x44   :  { %v151_v2 = vadd.f32 %v149_v17, %v129_v11  ;;  %v167_v22 = vmax.f32 %v165_v18, 0.0  ;;  %v146_v25 = vmax.f32 %v144_v21, 0.0 }
  0x45   :  { %v168_v1 = vmax.f32 %v166_v23, 0.0 }
  0x46   :  { %v171_v26 = vmul.f32 %v170_v20, %v167_v22  ;;  %v150_v27 = vmul.f32 %v148_v5, %v146_v25 }
  0x47   :  { %v172_v3 = vmul.f32 %v170_v20, %v168_v1 }
  0x48   :  { %v173_v28 = vadd.f32 %v171_v26, %v151_v2  ;;  %v152_v29 = vadd.f32 %v150_v27, %v130_v24 }
  0x4a   :  { %175 = vst [vmem:[#allocation9] sm:$0xff] %v173_v28  ;;  %v174_v30 = vadd.f32 %v172_v3, %v152_v29 }
  0x4c   :  { %176 = vst [vmem:[#allocation9 + $0x8] sm:$0xff] %v174_v30 }
  0x4d   :  { %267 = shalt.err (!%p264_p5)
}
  0x4e   :  { %s286_s9 = smov 128   ;;  %s287_s3 = smov 8  }
  0x4f   :  { %188 = dma.vmem_to_hbm [thread:$0]  %s183_s7, 256, %s423_s5, [#allocation4], %s286_s9, %s286_s9, %s287_s3  }
  0x50   :  { %280 = dma.done.wait [#allocation4], 256  }
  0x51   :  { %281 = vsyncadd [#allocation4], 4294967040 }
  0x52   :  { %192 = vsyncpa [#allocation4], 1 }
  0x53   :  { %193 = vsyncpa [#allocation5], 1 }
  0x54   :  { %194 = vsyncpa [#allocation7], 1 }

</bundles_post_ra>
